<compile_context>
chip_gen: v7x
topology: tpu7x:2x2x1
jax: 0.10.0
libtpu: 0.0.40
codegen_flags: <defaults>
</compile_context>

<pallas_src>
import jax
import jax.numpy as jnp
from jax.experimental import pallas as pl
from jax.experimental.pallas import tpu as pltpu


def _round_up(x, m):
    return (x + m - 1) // m * m


# --------------------------------------------------------------------------
# Kernel
# --------------------------------------------------------------------------
def _build_kernel(num_extra_hidden):
    """Kernel for (1 + num_extra_hidden) ReLU hidden layers + width-1 head.

    Ref layout (all feature-major):
      xt_ref   : (Din, tm)        streamed column tile of [obs | act]^T
      w0_ref   : (H0, Din)        fused [Wo ; Wa]^T              (resident)
      b0_ref   : (H0, 1)  f32                                     (resident)
      hidden   : (H_i, H_{i-1}) / (H_i, 1) f32 pairs              (resident)
      wout_ref : (H_last, 1) f32                                  (resident)
      bout_ref : (1,) f32 in SMEM
      out_ref  : (1, tm) f32      lane-dense output row
    """

    def kernel(*refs):
        xt_ref, w0_ref, b0_ref = refs[0], refs[1], refs[2]
        hidden_refs = refs[3:3 + 2 * num_extra_hidden]
        wout_ref, bout_ref, out_ref = refs[3 + 2 * num_extra_hidden:]

        # Layer 0: (H0, Din) @ (Din, tm) on the MXU, f32 accumulate; the act
        # contribution is already folded into the fused weight / operand.
        h = jnp.dot(w0_ref[...], xt_ref[...],
                    preferred_element_type=jnp.float32)          # (H0, tm) f32
        h = jnp.maximum(h + b0_ref[...], 0.0)

        # Remaining hidden layers (unrolled at trace time).
        for i in range(num_extra_hidden):
            w_ref, b_ref = hidden_refs[2 * i], hidden_refs[2 * i + 1]
            h = jnp.dot(w_ref[...], h.astype(w_ref.dtype),
                        preferred_element_type=jnp.float32)      # (H_i, tm)
            h = jnp.maximum(h + b_ref[...], 0.0)

        # Width-1 output head: VPU multiply + sublane reduce (keeps the MXU out
        # of a 1-wide matmul) directly producing the lane-dense (1, tm) row.
        q = jnp.sum(h * wout_ref[...], axis=0, keepdims=True) + bout_ref[0]
        out_ref[...] = q.astype(out_ref.dtype)

    return kernel


# --------------------------------------------------------------------------
# Tile sizing
# --------------------------------------------------------------------------
def _vmem_bytes(tm, din, widths, itemsize):
    """Rough per-step VMEM footprint used to clamp the column tile."""
    # Double-buffered streamed x^T tile + (1, tm) output row.
    streamed = 2 * (din * tm * itemsize) + 2 * (tm * 4)
    # Resident weights/biases (constant-index blocks are still double-buffered
    # by the pipeline; use pipeline_mode=pl.Buffered(1) on them if this term
    # ever dominates at production hidden widths).
    w_elems = (widths[0] * din
               + sum(a * b for a, b in zip(widths[:-1], widths[1:]))
               + widths[-1])
    resident = 2 * (w_elems * itemsize + (sum(widths) + 1) * 4)
    # f32 intermediates (~2 live h tiles).
    live = 2 * max(widths) * tm * 4
    return streamed + resident + live


def _pick_tm(m_pad, din, widths, itemsize, target_cols, budget):
    cands = [c for c in (8192, 4096, 2048, 1024, 512, 256, 128)
             if c <= target_cols and c <= m_pad and m_pad % c == 0]
    if not cands:                     # unreachable: m_pad is a multiple of 128
        cands = [128]
    # v7x has two TensorCores: keep the ("parallel",) grid at >= 2 steps
    # whenever there is enough work to split.
    multi = [c for c in cands if m_pad // c >= 2]
    if multi:
        cands = multi
    for tm in cands:                  # descending: biggest tile that fits VMEM
        if _vmem_bytes(tm, din, widths, itemsize) <= budget:
            return tm
    return cands[-1]


# --------------------------------------------------------------------------
# Wrapper
# --------------------------------------------------------------------------
def svgd_mlp_q_function(obs, act, params, *, matmul_dtype=jnp.bfloat16,
                        target_cols=2048, vmem_budget_bytes=24 << 20):
    """obs: (N, K, Do) f32, act: (N, 1, Da) f32 -> (N, K, 1) f32.

    matmul_dtype: dtype of the MXU operands (bf16 default: fewer MXU passes on
    every TPU generation, half the streamed-operand HBM bytes; pass jnp.float32
    for the exact-precision path).  Bias adds / ReLUs / head reduce stay f32.
    target_cols: max columns per grid step (raise to 4096/8192 on v6e/v7x).
    """
    wo, wa, b0, hidden, w_out, b_out = params
    N, K, Do = obs.shape
    _, _, Da = act.shape
    H0 = wo.shape[1]
    widths = [H0] + [w.shape[1] for (w, _) in hidden]
    Din = Do + Da
    M = N * K
    itemsize = jnp.dtype(matmul_dtype).itemsize

    # Pad the flattened column count only up to the next small boundary (the
    # old version padded up to a whole 1024-row tile in f32).
    if M >= 16384:
        M_pad = _round_up(M, 2048)
    elif M > 1024:
        M_pad = _round_up(M, 512)
    else:
        M_pad = _round_up(M, 128)

    # ---- Single operand-construction pass: x^T = [obs | act(broadcast)]^T in
    # the MXU dtype.  obs.reshape is free; broadcast/concat/cast/transpose/pad
    # fuse into producing this one (Din, M_pad) array -- the only wrapper-side
    # copy of the streamed data (the transpose is what buys the feature-major
    # kernel layout, so the cast happens "where a copy is already being paid").
    act_b = jnp.broadcast_to(act, (N, K, Da)).reshape(M, Da)
    x_t = jnp.concatenate([obs.reshape(M, Do), act_b],
                          axis=1).astype(matmul_dtype).T           # (Din, M)
    if M_pad != M:
        x_t = jnp.pad(x_t, ((0, 0), (0, M_pad - M)))               # (Din, M_pad)

    # ---- Resident parameters, cast once at trace time (biases stay f32).
    w0_t = jnp.concatenate([wo, wa], axis=0).T.astype(matmul_dtype)  # (H0, Din)
    b0_c = b0.reshape(-1, 1).astype(jnp.float32)                     # (H0, 1)
    hidden_ops = []
    for w, b in hidden:
        hidden_ops.append(w.T.astype(matmul_dtype))                  # (H_i, H_{i-1})
        hidden_ops.append(b.reshape(-1, 1).astype(jnp.float32))      # (H_i, 1)
    w_out_c = w_out.reshape(-1, 1).astype(jnp.float32)               # (H_last, 1)
    b_out_s = b_out.reshape(1).astype(jnp.float32)                   # (1,) -> SMEM

    tm = _pick_tm(M_pad, Din, widths, itemsize, target_cols, vmem_budget_bytes)
    grid = (M_pad // tm,)

    def const(shape):
        return pl.BlockSpec(shape, lambda i: (0,) * len(shape))

    in_specs = [pl.BlockSpec((Din, tm), lambda i: (0, i)),   # streamed x^T tile
                const(w0_t.shape),                            # fused [Wo;Wa]^T
                const(b0_c.shape)]                            # b0 column
    for arr in hidden_ops:
        in_specs.append(const(arr.shape))
    in_specs.append(const(w_out_c.shape))                     # output-head weights
    in_specs.append(pl.BlockSpec(memory_space=pltpu.MemorySpace.SMEM))  # b_out

    out = pl.pallas_call(
        _build_kernel(len(hidden)),
        out_shape=jax.ShapeDtypeStruct((1, M_pad), jnp.float32),
        grid_spec=pltpu.PrefetchScalarGridSpec(
            num_scalar_prefetch=0,
            grid=grid,
            in_specs=in_specs,
            out_specs=pl.BlockSpec((1, tm), lambda i: (0, i)),  # lane-dense row
        ),
        compiler_params=pltpu.CompilerParams(
            dimension_semantics=("parallel",)),
    )(x_t, w0_t, b0_c, *hidden_ops, w_out_c, b_out_s)

    return out[0, :M].reshape(N, K, 1)


# --------------------------------------------------------------------------
# Parameter init (mirrors the PyTorch module) and pure-JAX reference
# --------------------------------------------------------------------------
def _xavier_uniform(key, fan_in, fan_out):
    # torch.nn.init.xavier_uniform: U(-a, a), a = sqrt(6 / (fan_in + fan_out)).
    # Stored as (fan_in, fan_out) == transpose of torch's (out, in) weight.
    bound = jnp.sqrt(6.0 / (fan_in + fan_out))
    return jax.random.uniform(key, (fan_in, fan_out), jnp.float32, -bound, bound)


def init_params(key, obs_dim, act_dim, hidden_sizes):
    hs = list(hidden_sizes)
    keys = jax.random.split(key, 2 + len(hs))
    wo = _xavier_uniform(keys[0], obs_dim, hs[0])          # observation_layer (no bias)
    wa = _xavier_uniform(keys[1], act_dim, hs[0])          # action_layer (no bias)
    b0 = jnp.zeros((hs[0],), jnp.float32)                  # concate_layer_bias
    hidden = []
    for i in range(len(hs) - 1):                           # Linear + ReLU pairs
        w = _xavier_uniform(keys[2 + i], hs[i], hs[i + 1])
        hidden.append((w, jnp.zeros((hs[i + 1],), jnp.float32)))
    w_out = _xavier_uniform(keys[1 + len(hs)], hs[-1], 1)  # final Linear(h, 1)
    b_out = jnp.zeros((1,), jnp.float32)
    return (wo, wa, b0, tuple(hidden), w_out, b_out)


def _reference(obs, act, params):
    wo, wa, b0, hidden, w_out, b_out = params
    h = obs @ wo + act @ wa + b0            # act (N,1,Da) broadcasts over K
    h = jnp.maximum(h, 0.0)
    for w, b in hidden:
        h = jnp.maximum(h @ w + b, 0.0)
    return h @ w_out + b_out                # (N, K, 1)


# --------------------------------------------------------------------------
if __name__ == "__main__":
    key = jax.random.PRNGKey(0)

    configs = (
        # module's example shapes: obs N x K x D1, act N x 1 x D2
        dict(N=2, K=8, obs_dim=16, act_dim=4, hidden_sizes=(32, 32)),
        # multi-step grid path (v7x two-TensorCore split)
        dict(N=8, K=32, obs_dim=16, act_dim=4, hidden_sizes=(32, 32)),
        # odd feature dims, unequal hidden widths, larger column tile
        dict(N=4, K=128, obs_dim=12, act_dim=3, hidden_sizes=(32, 16)),
    )

    for cfg in configs:
        kp, ko, ka, key = jax.random.split(key, 4)
        params = init_params(kp, cfg["obs_dim"], cfg["act_dim"], cfg["hidden_sizes"])
        obs = jax.random.normal(ko, (cfg["N"], cfg["K"], cfg["obs_dim"]), jnp.float32)
        act = jax.random.normal(ka, (cfg["N"], 1, cfg["act_dim"]), jnp.float32)

        ref = _reference(obs, act, params)

        # exact-precision path (f32 MXU operands)
        out_f32 = jax.block_until_ready(
            svgd_mlp_q_function(obs, act, params, matmul_dtype=jnp.float32))
        assert out_f32.shape == (cfg["N"], cfg["K"], 1), out_f32.shape
        assert jnp.allclose(out_f32, ref, atol=1e-4, rtol=1e-4), "f32 mismatch vs reference"

        # default bf16-streamed MXU operands (relaxed tolerance)
        out_bf16 = jax.block_until_ready(svgd_mlp_q_function(obs, act, params))
        assert out_bf16.shape == (cfg["N"], cfg["K"], 1), out_bf16.shape
        assert jnp.allclose(out_bf16, ref, atol=5e-2, rtol=5e-2), "bf16 mismatch vs reference"

    print("KERNEL_OK")
</pallas_src>

<mosaic_0001>
module attributes {stable_mosaic.version = 11 : i64} {
  func.func @kernel(%arg0: i32, %arg1: memref<20x128xf32, #tpu.memory_space<vmem>>, %arg2: memref<32x20xf32, #tpu.memory_space<vmem>>, %arg3: memref<32x1xf32, #tpu.memory_space<vmem>>, %arg4: memref<32x32xf32, #tpu.memory_space<vmem>>, %arg5: memref<32x1xf32, #tpu.memory_space<vmem>>, %arg6: memref<32x1xf32, #tpu.memory_space<vmem>>, %arg7: memref<1xf32, #tpu.memory_space<smem>>, %arg8: memref<1x128xf32, #tpu.memory_space<vmem>>) attributes {dimension_semantics = [#tpu.dimension_semantics<parallel>], iteration_bounds = array<i64: 1>, scalar_prefetch = 0 : i64, scratch_operands = 0 : i64, tpu.core_type = #tpu.core_type<tc>, window_params = [{transform_indices = @transform_0, window_bounds = array<i64: 20, 128>}, {pipeline_mode = #tpu.pipeline_mode<synchronous>, transform_indices = @transform_1, window_bounds = array<i64: 32, 20>}, {pipeline_mode = #tpu.pipeline_mode<synchronous>, transform_indices = @transform_2, window_bounds = array<i64: 32, 1>}, {pipeline_mode = #tpu.pipeline_mode<synchronous>, transform_indices = @transform_3, window_bounds = array<i64: 32, 32>}, {pipeline_mode = #tpu.pipeline_mode<synchronous>, transform_indices = @transform_4, window_bounds = array<i64: 32, 1>}, {pipeline_mode = #tpu.pipeline_mode<synchronous>, transform_indices = @transform_5, window_bounds = array<i64: 32, 1>}, {transform_indices = @transform_6, window_bounds = array<i64: 1>}, {transform_indices = @transform_7, window_bounds = array<i64: 1, 128>}]} {
    %c0 = arith.constant 0 : index
    %c0_0 = arith.constant 0 : index
    %0 = vector.load %arg2[%c0, %c0_0] : memref<32x20xf32, #tpu.memory_space<vmem>>, vector<32x20xf32>
    %c0_1 = arith.constant 0 : index
    %c0_2 = arith.constant 0 : index
    %1 = vector.load %arg1[%c0_1, %c0_2] : memref<20x128xf32, #tpu.memory_space<vmem>>, vector<20x128xf32>
    %cst = arith.constant dense<0.000000e+00> : vector<32x128xf32>
    %2 = tpu.matmul %0, %1, %cst {dimension_numbers = #tpu.dot_dimension_numbers<[1], [0], [0], [1], [0, 0, 1, 1], [], []>} : vector<32x20xf32>, vector<20x128xf32>, vector<32x128xf32> -> vector<32x128xf32>
    %c0_3 = arith.constant 0 : index
    %c0_4 = arith.constant 0 : index
    %3 = vector.load %arg3[%c0_3, %c0_4] : memref<32x1xf32, #tpu.memory_space<vmem>>, vector<32x1xf32>
    %4 = vector.broadcast %3 : vector<32x1xf32> to vector<32x128xf32>
    %5 = arith.addf %2, %4 : vector<32x128xf32>
    %cst_5 = arith.constant 0.000000e+00 : f32
    %6 = vector.broadcast %cst_5 : f32 to vector<32x128xf32>
    %7 = arith.maximumf %5, %6 : vector<32x128xf32>
    %c0_6 = arith.constant 0 : index
    %c0_7 = arith.constant 0 : index
    %8 = vector.load %arg4[%c0_6, %c0_7] : memref<32x32xf32, #tpu.memory_space<vmem>>, vector<32x32xf32>
    %cst_8 = arith.constant dense<0.000000e+00> : vector<32x128xf32>
    %9 = tpu.matmul %8, %7, %cst_8 {dimension_numbers = #tpu.dot_dimension_numbers<[1], [0], [0], [1], [0, 0, 1, 1], [], []>} : vector<32x32xf32>, vector<32x128xf32>, vector<32x128xf32> -> vector<32x128xf32>
    %c0_9 = arith.constant 0 : index
    %c0_10 = arith.constant 0 : index
    %10 = vector.load %arg5[%c0_9, %c0_10] : memref<32x1xf32, #tpu.memory_space<vmem>>, vector<32x1xf32>
    %11 = vector.broadcast %10 : vector<32x1xf32> to vector<32x128xf32>
    %12 = arith.addf %9, %11 : vector<32x128xf32>
    %cst_11 = arith.constant 0.000000e+00 : f32
    %13 = vector.broadcast %cst_11 : f32 to vector<32x128xf32>
    %14 = arith.maximumf %12, %13 : vector<32x128xf32>
    %c0_12 = arith.constant 0 : index
    %c0_13 = arith.constant 0 : index
    %15 = vector.load %arg6[%c0_12, %c0_13] : memref<32x1xf32, #tpu.memory_space<vmem>>, vector<32x1xf32>
    %16 = vector.broadcast %15 : vector<32x1xf32> to vector<32x128xf32>
    %17 = arith.mulf %14, %16 : vector<32x128xf32>
    %cst_14 = arith.constant dense<0.000000e+00> : vector<128xf32>
    %18 = vector.multi_reduction <add>, %17, %cst_14 [0] : vector<32x128xf32> to vector<128xf32>
    %19 = vector.shape_cast %18 : vector<128xf32> to vector<1x128xf32>
    %c0_15 = arith.constant 0 : index
    %20 = memref.load %arg7[%c0_15] : memref<1xf32, #tpu.memory_space<smem>>
    %21 = vector.broadcast %20 : f32 to vector<1x128xf32>
    %22 = arith.addf %19, %21 : vector<1x128xf32>
    %c0_16 = arith.constant 0 : index
    %c0_17 = arith.constant 0 : index
    %23 = vector.load %arg8[%c0_16, %c0_17] : memref<1x128xf32, #tpu.memory_space<vmem>>, vector<1x128xf32>
    tpu.vector_store %arg8[%c0_16, %c0_17], %22 {strides = array<i32>} : memref<1x128xf32, #tpu.memory_space<vmem>>, vector<1x128xf32>,
    return
  }
  func.func @transform_0(%arg0: i32) -> (i32, i32) {
    %c0_i32 = arith.constant 0 : i32
    %c0_i32_0 = arith.constant 0 : i32
    return %c0_i32, %arg0 : i32, i32
  }
  func.func @transform_1(%arg0: i32) -> (i32, i32) {
    %c0_i32 = arith.constant 0 : i32
    %c0_i32_0 = arith.constant 0 : i32
    %c0_i32_1 = arith.constant 0 : i32
    return %c0_i32, %c0_i32_0 : i32, i32
  }
  func.func @transform_2(%arg0: i32) -> (i32, i32) {
    %c0_i32 = arith.constant 0 : i32
    %c0_i32_0 = arith.constant 0 : i32
    %c0_i32_1 = arith.constant 0 : i32
    return %c0_i32, %c0_i32_0 : i32, i32
  }
  func.func @transform_3(%arg0: i32) -> (i32, i32) {
    %c0_i32 = arith.constant 0 : i32
    %c0_i32_0 = arith.constant 0 : i32
    %c0_i32_1 = arith.constant 0 : i32
    return %c0_i32, %c0_i32_0 : i32, i32
  }
  func.func @transform_4(%arg0: i32) -> (i32, i32) {
    %c0_i32 = arith.constant 0 : i32
    %c0_i32_0 = arith.constant 0 : i32
    %c0_i32_1 = arith.constant 0 : i32
    return %c0_i32, %c0_i32_0 : i32, i32
  }
  func.func @transform_5(%arg0: i32) -> (i32, i32) {
    %c0_i32 = arith.constant 0 : i32
    %c0_i32_0 = arith.constant 0 : i32
    %c0_i32_1 = arith.constant 0 : i32
    return %c0_i32, %c0_i32_0 : i32, i32
  }
  func.func @transform_6(%arg0: i32) -> i32 {
    %c0_i32 = arith.constant 0 : i32
    %c0_i32_0 = arith.constant 0 : i32
    return %c0_i32 : i32
  }
  func.func @transform_7(%arg0: i32) -> (i32, i32) {
    %c0_i32 = arith.constant 0 : i32
    %c0_i32_0 = arith.constant 0 : i32
    return %c0_i32, %arg0 : i32, i32
  }
}

</mosaic_0001>

<bundles_post_ra>
// kernel: tpu_custom_call.1
= control target key start
LH: loop header
LB: loop body
LE: loop exit
PB: predicated region body
PF: predicated region fallthrough
CT: control target
= control target key end

     0   :  { %vm59_vm0 = vcmask 162816   ;;  %vm72_vm1 = vcmask 1043456   ;;  %v440_v5 = vmov 0   ;;  %s576_s0 = inlined_call_operand.vmem [shape: f32[20,128], index: 0, kind: input, shape index: {}]   ;;  %s577_s1 = inlined_call_operand.vmem [shape: f32[32,20], index: 1, kind: input, shape index: {}]   ;;  %s578_s2 = inlined_call_operand.vmem [shape: f32[32,1], index: 2, kind: input, shape index: {}]   ;;  %s579_s3 = inlined_call_operand.vmem [shape: f32[32,32], index: 3, kind: input, shape index: {}]   ;;  %s580_s4 = inlined_call_operand.vmem [shape: f32[32,1], index: 4, kind: input, shape index: {}]   ;;  %s581_s5 = inlined_call_operand.vmem [shape: f32[32,1], index: 5, kind: input, shape index: {}]   ;;  %s582_s6 = inlined_call_operand.<no memory space> [shape: f32[1], index: 6, kind: input, shape index: {}]   ;;  %s583_s7 = inlined_call_operand.hbm [shape: f32[1,128], index: 7, kind: output, shape index: {}]  }
   0x1   :  { %v32_v0 = vld [vmem:[%s576_s0] sm:$0xff]  ;;  %v33_v1 = vld [vmem:[%s576_s0 + $0x8] sm:$0xff]  ;;  %v34_v4 = vld [vmem:[%s576_s0 + $0x10] sm:$0xf]  ;;  %414 = vset.pattern.permute.xlu0 %v440_v5  ;;  %415 = vset.pattern.permute.xlu1 %v440_v5 }
   0x2   :  { %v400_v2 = vpack.c.bf16 %v33_v1, %v32_v0  ;;  %v28_v3 = vld [vmem:[%s577_s1] sm:$0xff]  ;;  %v37_v7 = vld [vmem:[%s578_s2 + $0x10] sm:$0xff]  ;;  %v36_v8 = vld [vmem:[%s578_s2 + $0x8] sm:$0xff] }
   0x3   :  { %380 = vmatprep.mubr.msk.f32.mxu0 %vm59_vm0, %v28_v3  ;;  %v35_v6 = vld [vmem:[%s578_s2] sm:$0xff]  ;;  %51 = vperm.xlu1 %415, %v37_v7   ;;  %v29_v9 = vld [vmem:[%s577_s1 + $0x8] sm:$0xff]  ;;  %v38_v10 = vld [vmem:[%s578_s2 + $0x18] sm:$0xff] }
   0x4   :  { %401 = vmatprep.subr.bf16.mxu0 %v400_v2  ;;  %41 = vperm.xlu0 %414, %v35_v6  }
   0x5   :  { %403 = vmatpush3.bf16.msra.mxu0 %v400_v2 }
   0x6   :  { %378 = vmatprep.subr.msk.mxu0 %vm72_vm1, %v34_v4 }
   0x7   :  { %13 = vsyncpa [#allocation4], 0  ;;  %v30_v11 = vld [vmem:[%s577_s1 + $0x10] sm:$0xff]  ;;  %v169_v12 = vld [vmem:[%s580_s4] sm:$0xff]  ;;  %56 = vperm.xlu1 %415, %v38_v10   ;;  %vm193_vm2 = vcmask 261120   ;;  %s441_s19 = smov [#allocation3]  }
   0x8   :  { %46 = vperm.xlu0 %414, %v36_v8   ;;  %v31_v13 = vld [vmem:[%s577_s1 + $0x18] sm:$0xff]  ;;  %v170_v14 = vld [vmem:[%s580_s4 + $0x8] sm:$0xff]  ;;  %v171_v15 = vld [vmem:[%s580_s4 + $0x10] sm:$0xff]  ;;  %s342_s20 = sshll.u32 %s441_s19, 4  ;;  %s343_s20 = int_to_ptr.vmem [resolvable:$true] %s342_s20 }
   0x9   :  { %379 = vmatpush3.msk.msra.mxu0 %vm72_vm1, %v34_v4  ;;  %v172_v16 = vld [vmem:[%s580_s4 + $0x18] sm:$0xff]  ;;  %v295_v17 = vld [vmem:[%s581_s5] sm:$0xff]  ;;  %v296_v18 = vld [vmem:[%s581_s5 + $0x8] sm:$0xff]  ;;  %s416_s21 = scalar_lea.vmem %s343_s20, 16  ;;  %s420_s22 = scalar_lea.vmem %s343_s20, 32 }
   0xa   :  { %381 = vmatmul.mubr.msk.f32.vlgmr.msra.gmra.mrb[0].mxu0 %vm59_vm0, %v29_v9  ;;  %v297_v19 = vld [vmem:[%s581_s5 + $0x10] sm:$0xff]  ;;  %v298_v20 = vld [vmem:[%s581_s5 + $0x18] sm:$0xff]  ;;  %v165_v21 = vld [vmem:[%s579_s3] sm:$0xff]  ;;  %p417_p0 = scmp.ne.s32.totalorder %s343_s20, %s416_s21  ;;  %p421_p1 = scmp.lt.s32.totalorder %s343_s20, %s343_s20 }
   0xb   :  { %383 = vmatprep.mubr.msk.f32.mxu0 %vm59_vm0, %v30_v11  ;;  %180 = vperm.xlu1 %415, %v170_v14   ;;  %v166_v40 = vld [vmem:[%s579_s3 + $0x8] sm:$0xff]  ;;  %v167_v41 = vld [vmem:[%s579_s3 + $0x10] sm:$0xff]  ;;  %v168_v42 = vld [vmem:[%s579_s3 + $0x18] sm:$0xff]  ;;  %v333_v11 = vstv %s582_s6  ;;  %p422_p2 = scmp.lt.s32.totalorder %s420_s22, %s416_s21 }
   0xc   :  { %175 = vperm.xlu0 %414, %v169_v12   ;;  %394 = vmatprep.mubr.msk.f32.mxu1 %vm193_vm2, %v165_v21 }
   0xd   :  { %p423_p3 = por %p422_p2, %p421_p1 }
   0xe   :  { %384 = vmatmul.mubr.msk.f32.gmra.mrb[2].mxu0 %vm59_vm0, %v31_v13 }
   0xf   :  { %190 = vperm.xlu1 %415, %v172_v16   ;;  %p424_p4 = pnand %p423_p3, %p417_p0 }
  0x10   :  { %185 = vperm.xlu0 %414, %v171_v15  }
  0x13   :  { %306 = vperm.xlu1 %415, %v296_v18  }
  0x14   :  { %301 = vperm.xlu0 %414, %v295_v17  }
  0x17   :  { %316 = vperm.xlu1 %415, %v298_v20  }
  0x18   :  { %311 = vperm.xlu0 %414, %v297_v19  }
  0x82   :  { %v52_v23 = vpop.permute.xlu1 %51 }
  0x83   :  { %v42_v22 = vpop.permute.xlu0 %41 }
  0x86   :  { %v57_v30 = vpop.permute.xlu1 %56 }
  0x87   :  { %v47_v24 = vpop.permute.xlu0 %46 }
  0x8a   :  { %v181_v44 = vpop.permute.xlu1 %180 }
  0x8b   :  { %v176_v43 = vpop.permute.xlu0 %175 }
  0x8e   :  { %v191_v46 = vpop.permute.xlu1 %190 }
  0x8f   :  { %v186_v45 = vpop.permute.xlu0 %185 }
  0x92   :  { %v307_v53 = vpop.permute.xlu1 %306 }
  0x93   :  { %v302_v51 = vpop.permute.xlu0 %301 }
  0x96   :  { %v317_v2 = vpop.permute.xlu1 %316 }
  0x97   :  { %v312_v0 = vpop.permute.xlu0 %311 }
  0xdd   :  { %v382_v25 = vpop.f32.mrb[0].mxu0 }
  0xde   :  { %v148_v26 = vadd.f32 %v382_v25, %v47_v24  ;;  %v142_v27 = vpop.f32.mrb[1].mxu0 }
  0xdf   :  { %v143_v28 = vadd.f32 %v142_v27, %v42_v22 }
  0xe0   :  { %v162_v29 = vmax.f32 %v148_v26, 0.0 }
  0xe1   :  { %v161_v31 = vmax.f32 %v143_v28, 0.0  ;;  %v385_v32 = vpop.f32.mrb[2].mxu0 }
  0xe2   :  { %v158_v33 = vadd.f32 %v385_v32, %v57_v30  ;;  %v152_v34 = vpop.f32.mrb[3].mxu0 }
  0xe3   :  { %v153_v35 = vadd.f32 %v152_v34, %v52_v23  ;;  %v404_v36 = vpack.c.bf16 %v162_v29, %v161_v31 }
  0xe4   :  { %v164_v37 = vmax.f32 %v158_v33, 0.0 }
  0xe5   :  { %v163_v38 = vmax.f32 %v153_v35, 0.0  ;;  %405 = vmatprep.subr.bf16.mxu1 %v404_v36 }
  0xe6   :  { %407 = vmatpush3.bf16.msra.mxu1 %v404_v36 }
  0xe7   :  { %v408_v39 = vpack.c.bf16 %v164_v37, %v163_v38 }
  0xe9   :  { %409 = vmatprep.subr.bf16.mxu1 %v408_v39 }
  0xea   :  { %411 = vmatpush3.bf16.msra.mxu1 %v408_v39 }
  0xed   :  { %395 = vmatmul.mubr.msk.f32.vlgmr.msra.gmra.mrb[0].mxu1 %vm193_vm2, %v166_v40 }
  0xee   :  { %397 = vmatprep.mubr.msk.f32.mxu1 %vm193_vm2, %v167_v41 }
  0xf1   :  { %398 = vmatmul.mubr.msk.f32.gmra.mrb[2].mxu1 %vm193_vm2, %v168_v42 }
 0x1c0   :  { %v396_v47 = vpop.f32.mrb[0].mxu1 }
 0x1c1   :  { %v278_v48 = vadd.f32 %v396_v47, %v181_v44  ;;  %v272_v49 = vpop.f32.mrb[1].mxu1 }
 0x1c2   :  { %v273_v50 = vadd.f32 %v272_v49, %v176_v43 }
 0x1c3   :  { %v292_v52 = vmax.f32 %v278_v48, 0.0 }
 0x1c4   :  { %v291_v54 = vmax.f32 %v273_v50, 0.0  ;;  %v399_v55 = vpop.f32.mrb[2].mxu1 }
 0x1c5   :  { %v320_v56 = vmul.f32 %v307_v53, %v292_v52  ;;  %v288_v57 = vadd.f32 %v399_v55, %v191_v46  ;;  %v282_v58 = vpop.f32.mrb[3].mxu1 }
 0x1c6   :  { %v319_v59 = vmul.f32 %v302_v51, %v291_v54  ;;  %v283_v60 = vadd.f32 %v282_v58, %v186_v45 }
 0x1c7   :  { %v294_v62 = vmax.f32 %v288_v57, 0.0 }
 0x1c8   :  { %v323_v61 = vadd.f32 %v320_v56, %v319_v59  ;;  %v293_v63 = vmax.f32 %v283_v60, 0.0 }
 0x1c9   :  { %v322_v3 = vmul.f32 %v317_v2, %v294_v62 }
 0x1ca   :  { %v321_v1 = vmul.f32 %v312_v0, %v293_v63 }
 0x1cc   :  { %v324_v4 = vadd.f32 %v323_v61, %v321_v1 }
 0x1ce   :  { %v325_v5 = vadd.f32 %v324_v4, %v322_v3 }
 0x1d0   :  { %v326_v6 = vrot.slane %v325_v5, 4 }
 0x1d2   :  { %v327_v7 = vadd.f32 %v326_v6, %v325_v5 }
 0x1d4   :  { %v328_v8 = vrot.slane %v327_v7, 2 }
 0x1d6   :  { %v329_v9 = vadd.f32 %v328_v8, %v327_v7 }
 0x1d8   :  { %v330_v10 = vrot.slane %v329_v9, 1 }
 0x1da   :  { %v331_v12 = vadd.f32 %v330_v10, %v329_v9 }
 0x1dc   :  { %v334_v13 = vadd.f32 %v333_v11, %v331_v12 }
 0x1de   :  { %335 = vst [vmem:[#allocation3] sm:$0x1] %v334_v13 }
 0x1df   :  { %427 = shalt.err (!%p424_p4)
}
 0x1e0   :  { %s428_s24 = scalar_lea.hbm %s583_s7, 16 }
 0x1e1   :  { %p429_p5 = scmp.ne.s32.totalorder %s583_s7, %s428_s24  ;;  %p432_p6 = scmp.lt.u32.totalorder %s428_s24, %s583_s7 }
 0x1e3   :  { %p434_p7 = pnand %p432_p6, %p429_p5 }
 0x1e5   :  { %437 = shalt.err (!%p434_p7)
}
 0x1e6   :  { %345 = dma.vmem_to_hbm [thread:$0]  %s343_s20, 16, %s583_s7, [#allocation4]  }
 0x1e7   :  { %438 = dma.done.wait [#allocation4], 16  }
 0x1e8   :  { %439 = vsyncadd [#allocation4], 4294967280 }
 0x1e9   :  { %349 = vsyncpa [#allocation4], 1 }

</bundles_post_ra>
